<compile_context>
chip_gen: v5e
topology: v5e:2x2
jax: 0.10.0
libtpu: 0.0.40
codegen_flags: <defaults>
</compile_context>

<pallas_src>
import jax
import jax.numpy as jnp
from jax.experimental import pallas as pl
from jax.experimental.pallas import tpu as pltpu

# ---- small problem sizes consistent with the module ----
B, CIN, H, W = 2, 4, 16, 16
K = 8                 # classes per head
NHEADS = 3
P = B * H * W         # 512 flattened pixels (multiple of 128)
K3 = NHEADS * K       # 24


# ----------------------------------------------------------------------------
# Fused kernel: heads (VPU outer-product matmul) + log-softmax NLL losses + acc.
#
# Inputs  (all VMEM, full-array):
#   x_ref:      (Cin, P)  f32   channels-on-sublane, pixels-on-lane
#   wt_ref:     (K3, Cin) f32   transposed head weights
#   b_ref:      (K3, 1)   f32   head biases
#   labels_ref: (1, P)    i32   -1 == ignore_index
# Outputs:
#   logits_ref: (K3, P)   f32
#   stats_ref:  (1, 8)    f32   [loss_1, loss_2, loss_3, acc, total, 0, 0, 0]
# ----------------------------------------------------------------------------
def fused_kernel(x_ref, wt_ref, b_ref, labels_ref, logits_ref, stats_ref):
    cin, p = x_ref.shape
    k3 = wt_ref.shape[0]
    k = k3 // NHEADS

    x = x_ref[...]                                  # (Cin, P)
    wt = wt_ref[...]                                # (K3, Cin)

    # --- three 1x1-conv heads as Cin broadcast multiply-adds on the VPU ---
    # logits[k, p] = sum_c w[c, k] * x[c, p] + b[k]
    logits = wt[:, 0:1] * x[0:1, :] + b_ref[...]    # (K3,1)*(1,P) + (K3,1) -> (K3,P)
    for c in range(1, cin):                         # static, tiny (Cin=4)
        logits = logits + wt[:, c:c + 1] * x[c:c + 1, :]
    logits_ref[...] = logits                        # lane-dense store (P % 128 == 0)

    # --- masking / counts ---
    labels = labels_ref[...]                        # (1, P) i32
    valid = labels >= 0                             # (1, P) bool
    validf = valid.astype(jnp.float32)
    count = jnp.sum(validf, axis=1, keepdims=True)  # (1, 1)
    inv_count = pl.reciprocal(count + 1e-10, approx=False)

    # one-hot along the class (sublane) axis
    cls_ids = jax.lax.broadcasted_iota(jnp.int32, (k, p), 0)   # (K, P)
    onehot = (cls_ids == labels).astype(jnp.float32)           # (K, P)

    # --- per-head masked-mean cross entropy (log-softmax over sublanes) ---
    per_head_loss = []
    for head in range(NHEADS):
        lg = logits[head * k:(head + 1) * k, :]                # (K, P) sublane slab
        m = jnp.max(lg, axis=0, keepdims=True)                 # (1, P)
        z = lg - m
        lse = jnp.log(jnp.sum(jnp.exp(z), axis=0, keepdims=True))
        logprob = z - lse                                      # (K, P)
        nll = -jnp.sum(logprob * onehot, axis=0, keepdims=True)  # (1, P)
        per_head_loss.append(
            jnp.sum(nll * validf, axis=1, keepdims=True) * inv_count  # (1, 1)
        )

    # --- pixel accuracy on head 1 (torch.max -> first max index tie-break) ---
    lg1 = logits[k:2 * k, :]                                   # (K, P)
    mx = jnp.max(lg1, axis=0, keepdims=True)                   # (1, P)
    preds = jnp.min(jnp.where(lg1 == mx, cls_ids, k), axis=0, keepdims=True)  # (1, P)
    correct = jnp.sum(
        jnp.where(valid & (preds == labels), 1.0, 0.0), axis=1, keepdims=True
    )
    acc = correct * inv_count                                  # (1, 1)

    # loss_1 = sem_loss(outputs[1]); loss_2 = ce_loss(outputs[0]); loss_3 = ce_loss(outputs[2])
    loss1 = per_head_loss[1]
    loss2 = per_head_loss[0]
    loss3 = per_head_loss[2]
    total = 0.6 * loss1 + 0.2 * loss2 + 0.2 * loss3

    # --- assemble stats into one vector, single store ---
    lane = jax.lax.broadcasted_iota(jnp.int32, (1, 8), 1)
    stats = jnp.zeros((1, 8), jnp.float32)
    stats = jnp.where(lane == 0, loss1, stats)
    stats = jnp.where(lane == 1, loss2, stats)
    stats = jnp.where(lane == 2, loss3, stats)
    stats = jnp.where(lane == 3, acc, stats)
    stats = jnp.where(lane == 4, total, stats)
    stats_ref[...] = stats


# ----------------------------------------------------------------------------
# Wrapper (plain-JAX glue: layout changes + single pallas_call)
# ----------------------------------------------------------------------------
_vmem_spec = pl.BlockSpec(memory_space=pltpu.MemorySpace.VMEM)


def full_model_forward(inputs_nchw, labels_nhw, w, b):
    Bn, Cin, Hn, Wn = inputs_nchw.shape
    Pn = Bn * Hn * Wn
    k3 = w.shape[1]
    k = k3 // NHEADS

    # channels-on-sublane, pixels-on-lane (pixel order: b, h, w)
    x_cp = jnp.transpose(inputs_nchw, (1, 0, 2, 3)).reshape(Cin, Pn)
    labels_1p = labels_nhw.reshape(1, Pn).astype(jnp.int32)
    wt = jnp.transpose(w)            # (K3, Cin)
    b_col = b.reshape(k3, 1)         # (K3, 1)

    logits_kp, stats = pl.pallas_call(
        fused_kernel,
        out_shape=(
            jax.ShapeDtypeStruct((k3, Pn), jnp.float32),
            jax.ShapeDtypeStruct((1, 8), jnp.float32),
        ),
        in_specs=[_vmem_spec, _vmem_spec, _vmem_spec, _vmem_spec],
        out_specs=(_vmem_spec, _vmem_spec),
    )(x_cp, wt, b_col, labels_1p)

    loss1 = stats[0, 0]
    loss2 = stats[0, 1]
    loss3 = stats[0, 2]
    acc = stats[0, 3]
    total = stats[0, 4]
    loss_sb = loss3

    # outputs back to NCHW list-of-3, matching the PyTorch module
    lg_kbhw = logits_kp.reshape(k3, Bn, Hn, Wn)
    outputs = [
        jnp.transpose(lg_kbhw[h * k:(h + 1) * k], (1, 0, 2, 3))
        for h in range(NHEADS)
    ]

    return total[None], outputs, acc, [loss1, loss2, loss3, loss_sb]


# ----------------------------------------------------------------------------
# Pure-JAX reference for a sanity check
# ----------------------------------------------------------------------------
def _ref_ce(logits_pk, labels_p):
    logp = jax.nn.log_softmax(logits_pk, axis=-1)
    valid = labels_p >= 0
    safe = jnp.where(valid, labels_p, 0)
    nll = -jnp.take_along_axis(logp, safe[:, None], axis=-1)[:, 0]
    return jnp.sum(jnp.where(valid, nll, 0.0)) / (
        jnp.sum(valid.astype(jnp.float32)) + 1e-10
    )


def _ref_acc(logits_pk, labels_p):
    preds = jnp.argmax(logits_pk, axis=-1)
    valid = labels_p >= 0
    correct = jnp.sum(jnp.where(valid & (preds == labels_p), 1.0, 0.0))
    return correct / (jnp.sum(valid.astype(jnp.float32)) + 1e-10)


if __name__ == "__main__":
    key = jax.random.PRNGKey(0)
    k1, k2, k3_, k4, k5 = jax.random.split(key, 5)

    inputs = jax.random.normal(k1, (B, CIN, H, W), dtype=jnp.float32)
    labels_cls = jax.random.randint(k2, (B, H, W), 0, K)
    ignore = jax.random.uniform(k3_, (B, H, W)) < 0.1
    labels = jnp.where(ignore, -1, labels_cls).astype(jnp.int32)

    w = (jax.random.normal(k4, (CIN, K3)) * 0.1).astype(jnp.float32)
    b = (jax.random.normal(k5, (1, K3)) * 0.01).astype(jnp.float32)

    loss, outputs, acc, loss_list = full_model_forward(inputs, labels, w, b)
    jax.block_until_ready((loss, outputs, acc, loss_list))

    # sanity check against pure-JAX reference (using the kernel-produced logits)
    lg_flat = jnp.concatenate(
        [jnp.transpose(o, (0, 2, 3, 1)).reshape(P, K) for o in outputs], axis=-1
    )
    lab_flat = labels.reshape(P)

    # verify the VPU head matmul itself against an XLA matmul
    x_flat = jnp.transpose(inputs, (0, 2, 3, 1)).reshape(P, CIN)
    ref_logits = x_flat @ w + b
    assert jnp.allclose(lg_flat, ref_logits, atol=1e-4, rtol=1e-4)

    r_l1 = _ref_ce(lg_flat[:, K:2 * K], lab_flat)
    r_l2 = _ref_ce(lg_flat[:, 0:K], lab_flat)
    r_l3 = _ref_ce(lg_flat[:, 2 * K:3 * K], lab_flat)
    r_acc = _ref_acc(lg_flat[:, K:2 * K], lab_flat)
    r_total = 0.6 * r_l1 + 0.2 * r_l2 + 0.2 * r_l3

    assert jnp.allclose(loss_list[0], r_l1, atol=1e-3, rtol=1e-3)
    assert jnp.allclose(loss_list[1], r_l2, atol=1e-3, rtol=1e-3)
    assert jnp.allclose(loss_list[2], r_l3, atol=1e-3, rtol=1e-3)
    assert jnp.allclose(acc, r_acc, atol=1e-3, rtol=1e-3)
    assert jnp.allclose(loss[0], r_total, atol=1e-3, rtol=1e-3)
    assert loss.shape == (1,)
    assert outputs[0].shape == (B, K, H, W)

    print("KERNEL_OK")
</pallas_src>

<mosaic_0001>
module attributes {stable_mosaic.version = 11 : i64} {
  func.func @fused_kernel(%arg0: memref<4x512xf32, #tpu.memory_space<vmem>>, %arg1: memref<24x4xf32, #tpu.memory_space<vmem>>, %arg2: memref<24x1xf32, #tpu.memory_space<vmem>>, %arg3: memref<1x512xi32, #tpu.memory_space<vmem>>, %arg4: memref<24x512xf32, #tpu.memory_space<vmem>>, %arg5: memref<1x8xf32, #tpu.memory_space<vmem>>) attributes {dimension_semantics = [], scalar_prefetch = 0 : i64, scratch_operands = 0 : i64, tpu.core_type = #tpu.core_type<tc>} {
    %c0 = arith.constant 0 : index
    %c0_0 = arith.constant 0 : index
    %0 = vector.load %arg0[%c0, %c0_0] : memref<4x512xf32, #tpu.memory_space<vmem>>, vector<4x512xf32>
    %c0_1 = arith.constant 0 : index
    %c0_2 = arith.constant 0 : index
    %1 = vector.load %arg1[%c0_1, %c0_2] : memref<24x4xf32, #tpu.memory_space<vmem>>, vector<24x4xf32>
    %2 = vector.extract_strided_slice %1 {offsets = [0, 0], sizes = [24, 1], strides = [1, 1]} : vector<24x4xf32> to vector<24x1xf32>
    %3 = vector.extract_strided_slice %0 {offsets = [0, 0], sizes = [1, 512], strides = [1, 1]} : vector<4x512xf32> to vector<1x512xf32>
    %4 = vector.broadcast %2 : vector<24x1xf32> to vector<24x512xf32>
    %5 = vector.broadcast %3 : vector<1x512xf32> to vector<24x512xf32>
    %6 = arith.mulf %4, %5 : vector<24x512xf32>
    %c0_3 = arith.constant 0 : index
    %c0_4 = arith.constant 0 : index
    %7 = vector.load %arg2[%c0_3, %c0_4] : memref<24x1xf32, #tpu.memory_space<vmem>>, vector<24x1xf32>
    %8 = vector.broadcast %7 : vector<24x1xf32> to vector<24x512xf32>
    %9 = arith.addf %6, %8 : vector<24x512xf32>
    %10 = vector.extract_strided_slice %1 {offsets = [0, 1], sizes = [24, 1], strides = [1, 1]} : vector<24x4xf32> to vector<24x1xf32>
    %11 = vector.extract_strided_slice %0 {offsets = [1, 0], sizes = [1, 512], strides = [1, 1]} : vector<4x512xf32> to vector<1x512xf32>
    %12 = vector.broadcast %10 : vector<24x1xf32> to vector<24x512xf32>
    %13 = vector.broadcast %11 : vector<1x512xf32> to vector<24x512xf32>
    %14 = arith.mulf %12, %13 : vector<24x512xf32>
    %15 = arith.addf %9, %14 : vector<24x512xf32>
    %16 = vector.extract_strided_slice %1 {offsets = [0, 2], sizes = [24, 1], strides = [1, 1]} : vector<24x4xf32> to vector<24x1xf32>
    %17 = vector.extract_strided_slice %0 {offsets = [2, 0], sizes = [1, 512], strides = [1, 1]} : vector<4x512xf32> to vector<1x512xf32>
    %18 = vector.broadcast %16 : vector<24x1xf32> to vector<24x512xf32>
    %19 = vector.broadcast %17 : vector<1x512xf32> to vector<24x512xf32>
    %20 = arith.mulf %18, %19 : vector<24x512xf32>
    %21 = arith.addf %15, %20 : vector<24x512xf32>
    %22 = vector.extract_strided_slice %1 {offsets = [0, 3], sizes = [24, 1], strides = [1, 1]} : vector<24x4xf32> to vector<24x1xf32>
    %23 = vector.extract_strided_slice %0 {offsets = [3, 0], sizes = [1, 512], strides = [1, 1]} : vector<4x512xf32> to vector<1x512xf32>
    %24 = vector.broadcast %22 : vector<24x1xf32> to vector<24x512xf32>
    %25 = vector.broadcast %23 : vector<1x512xf32> to vector<24x512xf32>
    %26 = arith.mulf %24, %25 : vector<24x512xf32>
    %27 = arith.addf %21, %26 : vector<24x512xf32>
    %c0_5 = arith.constant 0 : index
    %c0_6 = arith.constant 0 : index
    %28 = vector.load %arg4[%c0_5, %c0_6] : memref<24x512xf32, #tpu.memory_space<vmem>>, vector<24x512xf32>
    tpu.vector_store %arg4[%c0_5, %c0_6], %27 {strides = array<i32>} : memref<24x512xf32, #tpu.memory_space<vmem>>, vector<24x512xf32>,
    %c0_7 = arith.constant 0 : index
    %c0_8 = arith.constant 0 : index
    %29 = vector.load %arg3[%c0_7, %c0_8] : memref<1x512xi32, #tpu.memory_space<vmem>>, vector<1x512xi32>
    %c0_i32 = arith.constant 0 : i32
    %30 = vector.broadcast %c0_i32 : i32 to vector<1x512xi32>
    %31 = arith.cmpi sge, %29, %30 : vector<1x512xi32>
    %32 = arith.extui %31 : vector<1x512xi1> to vector<1x512xi32>
    %33 = arith.sitofp %32 : vector<1x512xi32> to vector<1x512xf32>
    %cst = arith.constant dense<0.000000e+00> : vector<1xf32>
    %34 = vector.multi_reduction <add>, %33, %cst [1] : vector<1x512xf32> to vector<1xf32>
    %35 = vector.shape_cast %34 : vector<1xf32> to vector<1x1xf32>
    %cst_9 = arith.constant 1.000000e-10 : f32
    %36 = vector.broadcast %cst_9 : f32 to vector<1x1xf32>
    %37 = arith.addf %35, %36 : vector<1x1xf32>
    %38 = tpu.reciprocal %37 : vector<1x1xf32> -> vector<1x1xf32>
    %39 = tpu.iota {dimensions = array<i32: 0>} : vector<8x512xi32>
    %40 = vector.broadcast %29 : vector<1x512xi32> to vector<8x512xi32>
    %41 = arith.cmpi eq, %39, %40 : vector<8x512xi32>
    %42 = arith.extui %41 : vector<8x512xi1> to vector<8x512xi32>
    %43 = arith.sitofp %42 : vector<8x512xi32> to vector<8x512xf32>
    %44 = vector.extract_strided_slice %27 {offsets = [0, 0], sizes = [8, 512], strides = [1, 1]} : vector<24x512xf32> to vector<8x512xf32>
    %cst_10 = arith.constant dense<0xFF800000> : vector<512xf32>
    %45 = vector.multi_reduction <maximumf>, %44, %cst_10 [0] : vector<8x512xf32> to vector<512xf32>
    %46 = vector.shape_cast %45 : vector<512xf32> to vector<1x512xf32>
    %47 = vector.broadcast %46 : vector<1x512xf32> to vector<8x512xf32>
    %48 = arith.subf %44, %47 : vector<8x512xf32>
    %49 = math.exp %48 : vector<8x512xf32>
    %cst_11 = arith.constant dense<0.000000e+00> : vector<512xf32>
    %50 = vector.multi_reduction <add>, %49, %cst_11 [0] : vector<8x512xf32> to vector<512xf32>
    %51 = vector.shape_cast %50 : vector<512xf32> to vector<1x512xf32>
    %52 = math.log %51 : vector<1x512xf32>
    %53 = vector.broadcast %52 : vector<1x512xf32> to vector<8x512xf32>
    %54 = arith.subf %48, %53 : vector<8x512xf32>
    %55 = arith.mulf %54, %43 : vector<8x512xf32>
    %cst_12 = arith.constant dense<0.000000e+00> : vector<512xf32>
    %56 = vector.multi_reduction <add>, %55, %cst_12 [0] : vector<8x512xf32> to vector<512xf32>
    %57 = vector.shape_cast %56 : vector<512xf32> to vector<1x512xf32>
    %cst_13 = arith.constant 0.000000e+00 : f32
    %58 = vector.broadcast %cst_13 : f32 to vector<1x512xf32>
    %59 = arith.subf %58, %57 : vector<1x512xf32>
    %60 = arith.mulf %59, %33 : vector<1x512xf32>
    %cst_14 = arith.constant dense<0.000000e+00> : vector<1xf32>
    %61 = vector.multi_reduction <add>, %60, %cst_14 [1] : vector<1x512xf32> to vector<1xf32>
    %62 = vector.shape_cast %61 : vector<1xf32> to vector<1x1xf32>
    %63 = arith.mulf %62, %38 : vector<1x1xf32>
    %64 = vector.extract_strided_slice %27 {offsets = [8, 0], sizes = [8, 512], strides = [1, 1]} : vector<24x512xf32> to vector<8x512xf32>
    %cst_15 = arith.constant dense<0xFF800000> : vector<512xf32>
    %65 = vector.multi_reduction <maximumf>, %64, %cst_15 [0] : vector<8x512xf32> to vector<512xf32>
    %66 = vector.shape_cast %65 : vector<512xf32> to vector<1x512xf32>
    %67 = vector.broadcast %66 : vector<1x512xf32> to vector<8x512xf32>
    %68 = arith.subf %64, %67 : vector<8x512xf32>
    %69 = math.exp %68 : vector<8x512xf32>
    %cst_16 = arith.constant dense<0.000000e+00> : vector<512xf32>
    %70 = vector.multi_reduction <add>, %69, %cst_16 [0] : vector<8x512xf32> to vector<512xf32>
    %71 = vector.shape_cast %70 : vector<512xf32> to vector<1x512xf32>
    %72 = math.log %71 : vector<1x512xf32>
    %73 = vector.broadcast %72 : vector<1x512xf32> to vector<8x512xf32>
    %74 = arith.subf %68, %73 : vector<8x512xf32>
    %75 = arith.mulf %74, %43 : vector<8x512xf32>
    %cst_17 = arith.constant dense<0.000000e+00> : vector<512xf32>
    %76 = vector.multi_reduction <add>, %75, %cst_17 [0] : vector<8x512xf32> to vector<512xf32>
    %77 = vector.shape_cast %76 : vector<512xf32> to vector<1x512xf32>
    %cst_18 = arith.constant 0.000000e+00 : f32
    %78 = vector.broadcast %cst_18 : f32 to vector<1x512xf32>
    %79 = arith.subf %78, %77 : vector<1x512xf32>
    %80 = arith.mulf %79, %33 : vector<1x512xf32>
    %cst_19 = arith.constant dense<0.000000e+00> : vector<1xf32>
    %81 = vector.multi_reduction <add>, %80, %cst_19 [1] : vector<1x512xf32> to vector<1xf32>
    %82 = vector.shape_cast %81 : vector<1xf32> to vector<1x1xf32>
    %83 = arith.mulf %82, %38 : vector<1x1xf32>
    %84 = vector.extract_strided_slice %27 {offsets = [16, 0], sizes = [8, 512], strides = [1, 1]} : vector<24x512xf32> to vector<8x512xf32>
    %cst_20 = arith.constant dense<0xFF800000> : vector<512xf32>
    %85 = vector.multi_reduction <maximumf>, %84, %cst_20 [0] : vector<8x512xf32> to vector<512xf32>
    %86 = vector.shape_cast %85 : vector<512xf32> to vector<1x512xf32>
    %87 = vector.broadcast %86 : vector<1x512xf32> to vector<8x512xf32>
    %88 = arith.subf %84, %87 : vector<8x512xf32>
    %89 = math.exp %88 : vector<8x512xf32>
    %cst_21 = arith.constant dense<0.000000e+00> : vector<512xf32>
    %90 = vector.multi_reduction <add>, %89, %cst_21 [0] : vector<8x512xf32> to vector<512xf32>
    %91 = vector.shape_cast %90 : vector<512xf32> to vector<1x512xf32>
    %92 = math.log %91 : vector<1x512xf32>
    %93 = vector.broadcast %92 : vector<1x512xf32> to vector<8x512xf32>
    %94 = arith.subf %88, %93 : vector<8x512xf32>
    %95 = arith.mulf %94, %43 : vector<8x512xf32>
    %cst_22 = arith.constant dense<0.000000e+00> : vector<512xf32>
    %96 = vector.multi_reduction <add>, %95, %cst_22 [0] : vector<8x512xf32> to vector<512xf32>
    %97 = vector.shape_cast %96 : vector<512xf32> to vector<1x512xf32>
    %cst_23 = arith.constant 0.000000e+00 : f32
    %98 = vector.broadcast %cst_23 : f32 to vector<1x512xf32>
    %99 = arith.subf %98, %97 : vector<1x512xf32>
    %100 = arith.mulf %99, %33 : vector<1x512xf32>
    %cst_24 = arith.constant dense<0.000000e+00> : vector<1xf32>
    %101 = vector.multi_reduction <add>, %100, %cst_24 [1] : vector<1x512xf32> to vector<1xf32>
    %102 = vector.shape_cast %101 : vector<1xf32> to vector<1x1xf32>
    %103 = arith.mulf %102, %38 : vector<1x1xf32>
    %104 = vector.extract_strided_slice %27 {offsets = [8, 0], sizes = [8, 512], strides = [1, 1]} : vector<24x512xf32> to vector<8x512xf32>
    %cst_25 = arith.constant dense<0xFF800000> : vector<512xf32>
    %105 = vector.multi_reduction <maximumf>, %104, %cst_25 [0] : vector<8x512xf32> to vector<512xf32>
    %106 = vector.shape_cast %105 : vector<512xf32> to vector<1x512xf32>
    %107 = vector.broadcast %106 : vector<1x512xf32> to vector<8x512xf32>
    %108 = arith.cmpf oeq, %104, %107 : vector<8x512xf32>
    %c8_i32 = arith.constant 8 : i32
    %109 = vector.broadcast %c8_i32 : i32 to vector<8x512xi32>
    %110 = arith.select %108, %39, %109 : vector<8x512xi1>, vector<8x512xi32>
    %cst_26 = arith.constant dense<2147483647> : vector<512xi32>
    %111 = vector.multi_reduction <minsi>, %110, %cst_26 [0] : vector<8x512xi32> to vector<512xi32>
    %112 = vector.shape_cast %111 : vector<512xi32> to vector<1x512xi32>
    %113 = arith.cmpi eq, %112, %29 : vector<1x512xi32>
    %114 = arith.andi %31, %113 : vector<1x512xi1>
    %cst_27 = arith.constant 1.000000e+00 : f32
    %cst_28 = arith.constant 0.000000e+00 : f32
    %115 = vector.broadcast %cst_27 : f32 to vector<1x512xf32>
    %116 = vector.broadcast %cst_28 : f32 to vector<1x512xf32>
    %117 = arith.select %114, %115, %116 : vector<1x512xi1>, vector<1x512xf32>
    %cst_29 = arith.constant dense<0.000000e+00> : vector<1xf32>
    %118 = vector.multi_reduction <add>, %117, %cst_29 [1] : vector<1x512xf32> to vector<1xf32>
    %119 = vector.shape_cast %118 : vector<1xf32> to vector<1x1xf32>
    %120 = arith.mulf %119, %38 : vector<1x1xf32>
    %cst_30 = arith.constant 6.000000e-01 : f32
    %121 = vector.broadcast %cst_30 : f32 to vector<1x1xf32>
    %122 = arith.mulf %121, %83 : vector<1x1xf32>
    %cst_31 = arith.constant 2.000000e-01 : f32
    %123 = vector.broadcast %cst_31 : f32 to vector<1x1xf32>
    %124 = arith.mulf %123, %63 : vector<1x1xf32>
    %125 = arith.addf %122, %124 : vector<1x1xf32>
    %cst_32 = arith.constant 2.000000e-01 : f32
    %126 = vector.broadcast %cst_32 : f32 to vector<1x1xf32>
    %127 = arith.mulf %126, %103 : vector<1x1xf32>
    %128 = arith.addf %125, %127 : vector<1x1xf32>
    %129 = tpu.iota {dimensions = array<i32: 1>} : vector<1x8xi32>
    %cst_33 = arith.constant 0.000000e+00 : f32
    %130 = vector.broadcast %cst_33 : f32 to vector<1x8xf32>
    %c0_i32_34 = arith.constant 0 : i32
    %131 = vector.broadcast %c0_i32_34 : i32 to vector<1x8xi32>
    %132 = arith.cmpi eq, %129, %131 : vector<1x8xi32>
    %133 = vector.shape_cast %83 : vector<1x1xf32> to vector<1x1xf32>
    %134 = vector.broadcast %133 : vector<1x1xf32> to vector<1x8xf32>
    %135 = arith.select %132, %134, %130 : vector<1x8xi1>, vector<1x8xf32>
    %c1_i32 = arith.constant 1 : i32
    %136 = vector.broadcast %c1_i32 : i32 to vector<1x8xi32>
    %137 = arith.cmpi eq, %129, %136 : vector<1x8xi32>
    %138 = vector.shape_cast %63 : vector<1x1xf32> to vector<1x1xf32>
    %139 = vector.broadcast %138 : vector<1x1xf32> to vector<1x8xf32>
    %140 = arith.select %137, %139, %135 : vector<1x8xi1>, vector<1x8xf32>
    %c2_i32 = arith.constant 2 : i32
    %141 = vector.broadcast %c2_i32 : i32 to vector<1x8xi32>
    %142 = arith.cmpi eq, %129, %141 : vector<1x8xi32>
    %143 = vector.shape_cast %103 : vector<1x1xf32> to vector<1x1xf32>
    %144 = vector.broadcast %143 : vector<1x1xf32> to vector<1x8xf32>
    %145 = arith.select %142, %144, %140 : vector<1x8xi1>, vector<1x8xf32>
    %c3_i32 = arith.constant 3 : i32
    %146 = vector.broadcast %c3_i32 : i32 to vector<1x8xi32>
    %147 = arith.cmpi eq, %129, %146 : vector<1x8xi32>
    %148 = vector.shape_cast %120 : vector<1x1xf32> to vector<1x1xf32>
    %149 = vector.broadcast %148 : vector<1x1xf32> to vector<1x8xf32>
    %150 = arith.select %147, %149, %145 : vector<1x8xi1>, vector<1x8xf32>
    %c4_i32 = arith.constant 4 : i32
    %151 = vector.broadcast %c4_i32 : i32 to vector<1x8xi32>
    %152 = arith.cmpi eq, %129, %151 : vector<1x8xi32>
    %153 = vector.shape_cast %128 : vector<1x1xf32> to vector<1x1xf32>
    %154 = vector.broadcast %153 : vector<1x1xf32> to vector<1x8xf32>
    %155 = arith.select %152, %154, %150 : vector<1x8xi1>, vector<1x8xf32>
    %c0_35 = arith.constant 0 : index
    %c0_36 = arith.constant 0 : index
    %156 = vector.load %arg5[%c0_35, %c0_36] : memref<1x8xf32, #tpu.memory_space<vmem>>, vector<1x8xf32>
    tpu.vector_store %arg5[%c0_35, %c0_36], %155 {strides = array<i32>} : memref<1x8xf32, #tpu.memory_space<vmem>>, vector<1x8xf32>,
    return
  }
}

</mosaic_0001>

<bundles_post_ra>
// kernel: tpu_custom_call.1
= control target key start
LH: loop header
LB: loop body
LE: loop exit
PB: predicated region body
PF: predicated region fallthrough
CT: control target
= control target key end

     0   :  { %11 = vsyncpa [#allocation3], 0  ;;  %v925_v2 = vmov 0   ;;  %s1389_s0 = inlined_call_operand.vmem [shape: f32[4,512], index: 0, kind: input, shape index: {}]   ;;  %s1390_s1 = inlined_call_operand.vmem [shape: f32[24,4], index: 1, kind: input, shape index: {}]   ;;  %s1391_s2 = inlined_call_operand.vmem [shape: f32[24,1], index: 2, kind: input, shape index: {}]   ;;  %s1392_s3 = inlined_call_operand.vmem [shape: s32[1,512], index: 3, kind: input, shape index: {}]   ;;  %s1393_s4 = inlined_call_operand.hbm [shape: f32[24,512], index: 4, kind: output, shape index: {0}]   ;;  %s1394_s5 = inlined_call_operand.hbm [shape: f32[1,8], index: 5, kind: output, shape index: {1}]  }
   0x1   :  { %v25_v0 = vld [vmem:[%s1390_s1 + $0x10] sm:$0xff]  ;;  %v23_v1 = vld [vmem:[%s1390_s1] sm:$0xff]  ;;  %813 = vset.pattern.permute.xlu1 %v925_v2  ;;  %812 = vset.pattern.permute.xlu0 %v925_v2  ;;  %v68_v3 = vld [vmem:[%s1391_s2 + $0x8] sm:$0xff] }
   0x2   :  { %38 = vperm.xlu1 %813, %v25_v0   ;;  %28 = vperm.xlu0 %812, %v23_v1  }
   0x3   :  { %12 = vsyncpa [#allocation5], 0  ;;  %814 = vset.pattern.permute.xlu2 %v925_v2  ;;  %v67_v4 = vld [vmem:[%s1391_s2] sm:$0xff]  ;;  %v24_v5 = vld [vmem:[%s1390_s1 + $0x8] sm:$0xff]  ;;  %v926_v6 = vmov 1   ;;  %v927_v8 = vmov 2   ;;  %v1395_v36 = vlaneseq }
   0x4   :  { %77 = vperm.xlu2 %814, %v68_v3   ;;  %v69_v7 = vld [vmem:[%s1391_s2 + $0x10] sm:$0xff]  ;;  %v928_v9 = vmov 3   ;;  %v21_v13 = vld [vmem:[%s1389_s0] sm:$0xff]  ;;  %v22_v15 = vld [vmem:[%s1389_s0 + $0x8] sm:$0xff]  ;;  %vm266_vm6 = vcmask 1040384   ;;  %s770_s9 = sshll.u32 %s1393_s4, 4  ;;  %s771_s9 = int_to_ptr.hbm [resolvable:$true] %s770_s9 }
   0x5   :  { %v109_v14 = vperm.slane %v21_v13, 1  ;;  %v110_v16 = vperm.slane %v21_v13, 5  ;;  %v111_v19 = vperm.slane %v22_v15, 1  ;;  %v112_v20 = vperm.slane %v22_v15, 5  ;;  %s930_s10 = smov [#allocation2]   ;;  %s931_s12 = smov 512  }
   0x6   :  { %v43_v21 = vperm.slane %v21_v13, 0  ;;  %v44_v23 = vperm.slane %v21_v13, 4  ;;  %v45_v24 = vperm.slane %v22_v15, 0  ;;  %v46_v25 = vperm.slane %v22_v15, 4  ;;  %s768_s11 = sshll.u32 %s930_s10, 4  ;;  %s932_s13 = smov 32   ;;  %s769_s11 = int_to_ptr.vmem [resolvable:$true] %s768_s11 }
   0x7   :  { %v993_v22 = vperm.slane %v109_v14, 1  ;;  %v157_v26 = vperm.slane %v21_v13, 2  ;;  %v995_v27 = vperm.slane %v110_v16, 1  ;;  %v158_v28 = vperm.slane %v21_v13, 6  ;;  %s933_s4 = smov [#allocation4]   ;;  %s784_s17 = sshll.u32 %s1394_s5, 4  ;;  %s785_s17 = int_to_ptr.hbm [resolvable:$true] %s784_s17 }
   0x8   :  { %v159_v29 = vperm.slane %v22_v15, 2  ;;  %v160_v30 = vperm.slane %v22_v15, 6  ;;  %v119_v31 = vperm.slane %v111_v19, 1  ;;  %v120_v32 = vperm.slane %v112_v20, 1  ;;  %s782_s14 = sshll.u32 %s933_s4, 4  ;;  %s783_s14 = int_to_ptr.vmem [resolvable:$true] %s782_s14 }
   0x9   :  { %v51_v33 = vperm.slane %v43_v21, 0  ;;  %v205_v34 = vperm.slane %v21_v13, 3  ;;  %v206_v37 = vperm.slane %v21_v13, 7  ;;  %v207_v38 = vperm.slane %v22_v15, 3 }
   0xa   :  { %72 = vperm.xlu1 %813, %v67_v4   ;;  %33 = vperm.xlu0 %812, %v24_v5   ;;  %v208_v39 = vperm.slane %v22_v15, 7  ;;  %v52_v40 = vperm.slane %v44_v23, 0  ;;  %v53_v41 = vperm.slane %v45_v24, 0  ;;  %v54_v42 = vperm.slane %v46_v25, 0 }
   0xb   :  { %v997_v43 = vperm.slane %v157_v26, 2  ;;  %v1002_v47 = vperm.slane %v158_v28, 2  ;;  %v1004_v48 = vperm.slane %v159_v29, 2  ;;  %v1006_v49 = vperm.slane %v160_v30, 2 }
   0xc   :  { %815 = vset.pattern.permute.xlu2 %v926_v6  ;;  %v1009_v53 = vperm.slane %v205_v34, 3  ;;  %v1012_v54 = vshrl.u32 %v1395_v36, 7  ;;  %v1014_v55 = vperm.slane %v206_v37, 3  ;;  %v1016_v56 = vperm.slane %v207_v38, 3 }
   0xd   :  { %98 = vperm.xlu2 %815, %v23_v1   ;;  %v1018_v57 = vperm.slane %v208_v39, 3 }
  0x12   :  { %82 = vperm.xlu1 %813, %v69_v7   ;;  %816 = vset.pattern.permute.xlu0 %v926_v6 }
  0x13   :  { %102 = vperm.xlu0 %816, %v24_v5  }
  0x15   :  { %106 = vperm.xlu2 %815, %v25_v0  }
  0x1a   :  { %817 = vset.pattern.permute.xlu1 %v927_v8 }
  0x1b   :  { %146 = vperm.xlu1 %817, %v23_v1   ;;  %819 = vset.pattern.permute.xlu0 %v927_v8 }
  0x1c   :  { %154 = vperm.xlu0 %819, %v25_v0  }
  0x1d   :  { %818 = vset.pattern.permute.xlu2 %v927_v8 }
  0x1e   :  { %150 = vperm.xlu2 %818, %v24_v5  }
  0x23   :  { %820 = vset.pattern.permute.xlu1 %v928_v9 }
  0x24   :  { %194 = vperm.xlu1 %820, %v23_v1   ;;  %822 = vset.pattern.permute.xlu0 %v928_v9 }
  0x26   :  { %821 = vset.pattern.permute.xlu2 %v928_v9 }
  0x27   :  { %198 = vperm.xlu2 %821, %v24_v5  }
  0x2c   :  { %202 = vperm.xlu1 %820, %v25_v0  }
  0x5e   :  { %v985_v10 = vpop.permute.xlu2 %77 }
  0x67   :  { %v99_v11 = vpop.permute.xlu2 %98 }
  0x68   :  { %v1000_v44 = vmul.f32 %v993_v22, %v99_v11  ;;  %v122_v50 = vmul.f32 %v995_v27, %v99_v11  ;;  %v123_v51 = vmul.f32 %v119_v31, %v99_v11  ;;  %v124_v52 = vmul.f32 %v120_v32, %v99_v11 }
  0x6f   :  { %v107_v12 = vpop.permute.xlu2 %106 }
  0x70   :  { %v129_v58 = vmul.f32 %v993_v22, %v107_v12  ;;  %v130_v59 = vmul.f32 %v995_v27, %v107_v12  ;;  %v131_v60 = vmul.f32 %v119_v31, %v107_v12  ;;  %v132_v61 = vmul.f32 %v120_v32, %v107_v12 }
  0x74   :  { %v39_v17 = vpop.permute.xlu1 %38  ;;  %v29_v18 = vpop.permute.xlu0 %28 }
  0x75   :  { %v55_v62 = vmul.f32 %v51_v33, %v29_v18  ;;  %v56_v63 = vmul.f32 %v52_v40, %v29_v18  ;;  %v57_v0 = vmul.f32 %v53_v41, %v29_v18  ;;  %v58_v1 = vmul.f32 %v54_v42, %v29_v18 }
  0x76   :  { %v63_v7 = vmul.f32 %v51_v33, %v39_v17  ;;  %v64_v8 = vmul.f32 %v52_v40, %v39_v17  ;;  %v65_v9 = vmul.f32 %v53_v41, %v39_v17  ;;  %v66_v11 = vmul.f32 %v54_v42, %v39_v17 }
  0x78   :  { %v151_v35 = vpop.permute.xlu2 %150 }
  0x79   :  { %v173_v13 = vmul.f32 %v997_v43, %v151_v35  ;;  %v174_v14 = vmul.f32 %v1002_v47, %v151_v35  ;;  %v175_v15 = vmul.f32 %v1004_v48, %v151_v35  ;;  %v176_v12 = vmul.f32 %v1006_v49, %v151_v35 }
  0x7c   :  { %v73_v45 = vpop.permute.xlu1 %72  ;;  %v34_v46 = vpop.permute.xlu0 %33 }
  0x7d   :  { %v59_v3 = vmul.f32 %v51_v33, %v34_v46  ;;  %v60_v4 = vmul.f32 %v52_v40, %v34_v46  ;;  %v61_v5 = vmul.f32 %v53_v41, %v34_v46  ;;  %v62_v6 = vmul.f32 %v54_v42, %v34_v46 }
  0x7e   :  { %v85_v16 = vadd.f32 %v73_v45, %v55_v62  ;;  %v86_v19 = vadd.f32 %v73_v45, %v56_v63  ;;  %v87_v20 = vadd.f32 %v73_v45, %v57_v0  ;;  %v88_v18 = vadd.f32 %v73_v45, %v58_v1 }
  0x7f   :  { %v89_v24 = vadd.f32 %v985_v10, %v59_v3  ;;  %v90_v25 = vadd.f32 %v985_v10, %v60_v4  ;;  %v91_v17 = vadd.f32 %v985_v10, %v61_v5  ;;  %v92_v26 = vadd.f32 %v985_v10, %v62_v6 }
  0x80   :  { %v133_v0 = vadd.f32 %v1000_v44, %v85_v16  ;;  %v134_v1 = vadd.f32 %v122_v50, %v86_v19  ;;  %v135_v3 = vadd.f32 %v123_v51, %v87_v20  ;;  %v136_v4 = vadd.f32 %v124_v52, %v88_v18 }
  0x81   :  { %v199_v23 = vpop.permute.xlu2 %198 }
  0x82   :  { %v221_v35 = vmul.f32 %v1009_v53, %v199_v23  ;;  %v222_v37 = vmul.f32 %v1014_v55, %v199_v23  ;;  %v223_v38 = vmul.f32 %v1016_v56, %v199_v23  ;;  %v224_v39 = vmul.f32 %v1018_v57, %v199_v23 }
  0x84   :  { %v83_v21 = vpop.permute.xlu1 %82 }
  0x85   :  { %v103_v28 = vpop.permute.xlu0 %102  ;;  %v93_v10 = vadd.f32 %v83_v21, %v63_v7  ;;  %v94_v46 = vadd.f32 %v83_v21, %v64_v8  ;;  %v95_v62 = vadd.f32 %v83_v21, %v65_v9  ;;  %v1048_v7 = vld [vmem:[%s1392_s3] sm:$0xf] }
  0x86   :  { %v125_v29 = vmul.f32 %v993_v22, %v103_v28  ;;  %v126_v30 = vmul.f32 %v995_v27, %v103_v28  ;;  %v127_v33 = vmul.f32 %v119_v31, %v103_v28  ;;  %v128_v34 = vmul.f32 %v120_v32, %v103_v28 }
  0x87   :  { %v96_v22 = vadd.f32 %v83_v21, %v66_v11  ;;  %v141_v8 = vadd.f32 %v129_v58, %v93_v10  ;;  %v142_v9 = vadd.f32 %v130_v59, %v94_v46  ;;  %v143_v11 = vadd.f32 %v131_v60, %v95_v62 }
  0x88   :  { %v137_v40 = vadd.f32 %v125_v29, %v89_v24  ;;  %v138_v41 = vadd.f32 %v126_v30, %v90_v25  ;;  %v139_v42 = vadd.f32 %v127_v33, %v91_v17  ;;  %v140_v45 = vadd.f32 %v128_v34, %v92_v26 }
  0x89   :  { %v1050_v44 = vadd.f32 %v132_v61, %v96_v22  ;;  %v293_v60 = vperm.slane %v1048_v7, 0  ;;  %v294_v20 = vperm.slane %v1048_v7, 1  ;;  %v295_v25 = vperm.slane %v1048_v7, 2 }
  0x8a   :  { %v185_v63 = vadd.f32 %v173_v13, %v137_v40  ;;  %v186_v27 = vadd.f32 %v174_v14, %v138_v41  ;;  %v187_v31 = vadd.f32 %v175_v15, %v139_v42  ;;  %v188_v32 = vadd.f32 %v176_v12, %v140_v45 }
  0x8b   :  { %v296_v17 = vperm.slane %v1048_v7, 3  ;;  %vm254_vm5 = vcmp.ge.s32.totalorder %v1048_v7, 0  ;;  %vm297_vm8 = vcmp.eq.s32.totalorder %v1012_v54, %v293_v60  ;;  %vm298_vm9 = vcmp.eq.s32.totalorder %v1012_v54, %v294_v20 }
  0x8c   :  { %v1037_v5 = vadd.f32 %v221_v35, %v185_v63  ;;  %v1039_v6 = vadd.f32 %v222_v37, %v186_v27  ;;  %v1041_v23 = vadd.f32 %v223_v38, %v187_v31  ;;  %v1043_v24 = vadd.f32 %v224_v39, %v188_v32 }
  0x8d   :  { %v147_v50 = vpop.permute.xlu1 %146  ;;  %vm299_vm10 = vcmp.eq.s32.totalorder %v1012_v54, %v295_v25  ;;  %vm300_vm11 = vcmp.eq.s32.totalorder %v1012_v54, %v296_v17 }
  0x8e   :  { %245 = vst [vmem:[#allocation2 + $0x20] sm:$0xff] %v1037_v5  ;;  %v427_v51 = vrot.slane %v1037_v5, 4  ;;  %v433_v52 = vrot.slane %v1039_v6, 4  ;;  %v439_v13 = vrot.slane %v1041_v23, 4  ;;  %v445_v14 = vrot.slane %v1043_v24, 4  ;;  %v155_v19 = vpop.permute.xlu0 %154 }
  0x8f   :  { %246 = vst [vmem:[#allocation2 + $0x28] sm:$0xff] %v1039_v6  ;;  %v169_v15 = vmul.f32 %v997_v43, %v147_v50  ;;  %v170_v58 = vmul.f32 %v1002_v47, %v147_v50  ;;  %v171_v59 = vmul.f32 %v1004_v48, %v147_v50  ;;  %v172_v21 = vmul.f32 %v1006_v49, %v147_v50 }
  0x90   :  { %247 = vst [vmem:[#allocation2 + $0x30] sm:$0xff] %v1041_v23  ;;  %v428_v61 = vmax.f32 %v1037_v5, %v427_v51  ;;  %v434_v12 = vmax.f32 %v1039_v6, %v433_v52  ;;  %v440_v16 = vmax.f32 %v1041_v23, %v439_v13  ;;  %v1069_v18 = vmax.f32 %v1043_v24, %v445_v14 }
  0x91   :  { %248 = vst [vmem:[#allocation2 + $0x38] sm:$0xff] %v1043_v24  ;;  %v181_v30 = vadd.f32 %v169_v15, %v133_v0  ;;  %v182_v33 = vadd.f32 %v170_v58, %v134_v1  ;;  %v183_v34 = vadd.f32 %v171_v59, %v135_v3  ;;  %v177_v35 = vmul.f32 %v997_v43, %v155_v19 }
  0x92   :  { %v429_v26 = vrot.slane %v428_v61, 2  ;;  %v435_v28 = vrot.slane %v434_v12, 2  ;;  %v441_v29 = vrot.slane %v440_v16, 2  ;;  %v178_v37 = vmul.f32 %v1002_v47, %v155_v19 }
  0x93   :  { %v179_v41 = vmul.f32 %v1004_v48, %v155_v19  ;;  %v447_v42 = vrot.slane %v1069_v18, 2  ;;  %v184_v45 = vadd.f32 %v172_v21, %v136_v4  ;;  %v180_v10 = vmul.f32 %v1006_v49, %v155_v19 }
  0x94   :  { %v430_v38 = vmax.f32 %v428_v61, %v429_v26  ;;  %v436_v39 = vmax.f32 %v434_v12, %v435_v28  ;;  %v442_v40 = vmax.f32 %v440_v16, %v441_v29  ;;  %v1079_v46 = vadd.f32 %v177_v35, %v141_v8 }
  0x95   :  { %v190_v27 = vadd.f32 %v178_v37, %v142_v9  ;;  %v191_v49 = vadd.f32 %v179_v41, %v143_v11 }
  0x96   :  { %v431_v62 = vrot.slane %v430_v38, 1  ;;  %v437_v22 = vrot.slane %v436_v39, 1  ;;  %v443_v63 = vrot.slane %v442_v40, 1  ;;  %v195_v31 = vpop.permute.xlu1 %194 }
  0x97   :  { %v217_v43 = vmul.f32 %v1009_v53, %v195_v31  ;;  %v218_v47 = vmul.f32 %v1014_v55, %v195_v31  ;;  %v219_v32 = vmul.f32 %v1016_v56, %v195_v31  ;;  %v220_v48 = vmul.f32 %v1018_v57, %v195_v31 }
  0x98   :  { %v432_v0 = vmax.f32 %v430_v38, %v431_v62  ;;  %v438_v1 = vmax.f32 %v436_v39, %v437_v22  ;;  %v1085_v3 = vmax.f32 %v442_v40, %v443_v63 }
  0x99   :  { %v1087_v4 = vadd.f32 %v217_v43, %v181_v30  ;;  %v1089_v8 = vadd.f32 %v218_v47, %v182_v33  ;;  %v1091_v50 = vadd.f32 %v219_v32, %v183_v34  ;;  %v1093_v9 = vadd.f32 %v220_v48, %v184_v45 }
  0x9a   :  { %v1096_v51 = vsub.f32 %v1037_v5, %v432_v0  ;;  %v1099_v52 = vsub.f32 %v1039_v6, %v438_v1  ;;  %vm663_vm0 = vcmp.eq.f32.partialorder %v1037_v5, %v432_v0  ;;  %vm664_vm1 = vcmp.eq.f32.partialorder %v1039_v6, %v438_v1 }
  0x9b   :  { %vm665_vm2 = vcmp.eq.f32.partialorder %v1041_v23, %v1085_v3  ;;  %v1106_v11 = vsel %vm663_vm0, %v1012_v54, 8  ;;  %v668_v13 = vsel %vm664_vm1, %v1012_v54, 8  ;;  %241 = vst [vmem:[#allocation2] sm:$0xff] %v1087_v4  ;;  %v309_v14 = vrot.slane %v1087_v4, 4 }
  0x9c   :  { %v455_v15 = vmul.f32 1.442695, %v1096_v51  ;;  %v457_v58 = vmul.f32 1.442695, %v1099_v52  ;;  %v669_v5 = vsel %vm665_vm2, %v1012_v54, 8  ;;  %v192_v6 = vadd.f32 %v180_v10, %v1050_v44  ;;  %242 = vst [vmem:[#allocation2 + $0x8] sm:$0xff] %v1089_v8 }
  0x9d   :  { %v680_v59 = vrot.slane %v668_v13, 4  ;;  %v689_v61 = vrot.slane %v669_v5, 4  ;;  %v310_v12 = vmax.f32 %v1087_v4, %v309_v14  ;;  %v315_v16 = vrot.slane %v1089_v8, 4  ;;  %243 = vst [vmem:[#allocation2 + $0x10] sm:$0xff] %v1091_v50 }
  0x9e   :  { %v671_v19 = vrot.slane %v1106_v11, 4  ;;  %v321_v21 = vrot.slane %v1091_v50, 4  ;;  %v327_v26 = vrot.slane %v1093_v9, 4  ;;  %823 = vpow2.f32 %v455_v15  ;;  %244 = vst [vmem:[#allocation2 + $0x18] sm:$0xff] %v1093_v9  ;;  %v203_v28 = vpop.permute.xlu1 %202 }
  0x9f   :  { %vm681_vm3 = vcmp.lt.s32.totalorder %v668_v13, %v680_v59  ;;  %vm690_vm4 = vcmp.lt.s32.totalorder %v669_v5, %v689_v61  ;;  %v311_v44 = vrot.slane %v310_v12, 2  ;;  %825 = vpow2.f32 %v457_v58 }
  0xa0   :  { %v1123_v29 = vsel %vm681_vm3, %v668_v13, %v680_v59  ;;  %v316_v30 = vmax.f32 %v1089_v8, %v315_v16  ;;  %v322_v33 = vmax.f32 %v1091_v50, %v321_v21  ;;  %v1128_v35 = vsel %vm690_vm4, %v669_v5, %v689_v61 }
  0xa1   :  { %v683_v34 = vrot.slane %v1123_v29, 2  ;;  %v312_v37 = vmax.f32 %v310_v12, %v311_v44  ;;  %v328_v38 = vmax.f32 %v1093_v9, %v327_v26  ;;  %v225_v41 = vmul.f32 %v1009_v53, %v203_v28 }
  0xa2   :  { %v317_v39 = vrot.slane %v316_v30, 2  ;;  %v323_v40 = vrot.slane %v322_v33, 2  ;;  %v226_v45 = vmul.f32 %v1014_v55, %v203_v28  ;;  %v227_v22 = vmul.f32 %v1016_v56, %v203_v28 }
  0xa3   :  { %v313_v10 = vrot.slane %v312_v37, 1  ;;  %v329_v62 = vrot.slane %v328_v38, 2  ;;  %v228_v63 = vmul.f32 %v1018_v57, %v203_v28  ;;  %v1136_v47 = vadd.f32 %v225_v41, %v1079_v46 }
  0xa4   :  { %v318_v31 = vmax.f32 %v316_v30, %v317_v39  ;;  %v324_v43 = vmax.f32 %v322_v33, %v323_v40  ;;  %v1138_v32 = vadd.f32 %v226_v45, %v190_v27  ;;  %v1141_v48 = vpop.eup %823  ;;  %v239_v55 = vadd.f32 %v227_v22, %v191_v49 }
  0xa5   :  { %v314_v53 = vmax.f32 %v312_v37, %v313_v10  ;;  %v330_v0 = vmax.f32 %v328_v38, %v329_v62  ;;  %v240_v1 = vadd.f32 %v228_v63, %v192_v6  ;;  %v1143_v13 = vpop.eup %825  ;;  %249 = vst [vmem:[#allocation2 + $0x40] sm:$0xff] %v1136_v47  ;;  %v545_v57 = vrot.slane %v1136_v47, 4 }
  0xa6   :  { %v319_v56 = vrot.slane %v318_v31, 1  ;;  %v325_v14 = vrot.slane %v324_v43, 1  ;;  %v551_v46 = vrot.slane %v1138_v32, 4  ;;  %250 = vst [vmem:[#allocation2 + $0x48] sm:$0xff] %v1138_v32  ;;  %v557_v58 = vrot.slane %v239_v55, 4 }
  0xa7   :  { %v331_v27 = vrot.slane %v330_v0, 1  ;;  %v1149_v15 = vsub.f32 %v1087_v4, %v314_v53  ;;  %v563_v5 = vrot.slane %v240_v1, 4  ;;  %251 = vst [vmem:[#allocation2 + $0x50] sm:$0xff] %v239_v55  ;;  %v546_v59 = vmax.f32 %v1136_v47, %v545_v57 }
  0xa8   :  { %v320_v49 = vmax.f32 %v318_v31, %v319_v56  ;;  %v326_v6 = vmax.f32 %v324_v43, %v325_v14  ;;  %v552_v61 = vmax.f32 %v1138_v32, %v551_v46  ;;  %252 = vst [vmem:[#allocation2 + $0x58] sm:$0xff] %v240_v1  ;;  %v558_v21 = vmax.f32 %v239_v55, %v557_v58 }
  0xa9   :  { %v332_v12 = vmax.f32 %v330_v0, %v331_v27  ;;  %v337_v16 = vmul.f32 1.442695, %v1149_v15  ;;  %v564_v26 = vmax.f32 %v240_v1, %v563_v5  ;;  %v547_v28 = vrot.slane %v546_v59, 2  ;;  %776 = dma.vmem_to_hbm [thread:$0]  %s769_s11, 1536, %s771_s9, [#allocation3], %s931_s12, %s931_s12, %s932_s13  }
  0xaa   :  { %v1156_v4 = vsub.f32 %v1089_v8, %v320_v49  ;;  %v1159_v44 = vsub.f32 %v1091_v50, %v326_v6  ;;  %v553_v30 = vrot.slane %v552_v61, 2  ;;  %v559_v37 = vrot.slane %v558_v21, 2 }
  0xab   :  { %v1162_v33 = vsub.f32 %v1093_v9, %v332_v12  ;;  %827 = vpow2.f32 %v337_v16  ;;  %v565_v38 = vrot.slane %v564_v26, 2  ;;  %v548_v41 = vmax.f32 %v546_v59, %v547_v28 }
  0xac   :  { %v339_v39 = vmul.f32 1.442695, %v1156_v4  ;;  %v341_v40 = vmul.f32 1.442695, %v1159_v44  ;;  %v554_v45 = vmax.f32 %v552_v61, %v553_v30  ;;  %v560_v10 = vmax.f32 %v558_v21, %v559_v37 }
  0xad   :  { %v343_v8 = vmul.f32 1.442695, %v1162_v33  ;;  %v566_v62 = vmax.f32 %v564_v26, %v565_v38  ;;  %v1396_v50 = vmov 0.0   ;;  %v549_v9 = vrot.slane %v548_v41, 1 }
  0xae   :  { %v798_v22 = vsel %vm254_vm5, 1.0, %v1396_v50  ;;  %829 = vpow2.f32 %v339_v39  ;;  %v555_v63 = vrot.slane %v554_v45, 1  ;;  %v561_v43 = vrot.slane %v560_v10, 1 }
  0xaf   :  { %v1170_v31 = vperm.slane %v798_v22, 0  ;;  %831 = vpow2.f32 %v341_v40  ;;  %v567_v53 = vrot.slane %v566_v62, 1  ;;  %v1172_v0 = vperm.slane %v798_v22, 1 }
  0xb0   :  { %833 = vpow2.f32 %v343_v8  ;;  %v550_v56 = vmax.f32 %v548_v41, %v549_v9  ;;  %v556_v14 = vmax.f32 %v554_v45, %v555_v63  ;;  %v1174_v57 = vperm.slane %v798_v22, 2 }
  0xb1   :  { %v828_v46 = vpop.eup %827  ;;  %v562_v27 = vmax.f32 %v560_v10, %v561_v43  ;;  %v568_v58 = vmax.f32 %v566_v62, %v567_v53  ;;  %v1176_v5 = vperm.slane %v798_v22, 3  ;;  %v267_v49 = vsel %vm266_vm6, %v1170_v31, 0.0 }
  0xb2   :  { %v345_v6 = vrot.slane %v828_v46, 4  ;;  %v1181_v59 = vsub.f32 %v1136_v47, %v550_v56  ;;  %v1184_v61 = vsub.f32 %v1138_v32, %v556_v14  ;;  %v268_v12 = vsel %vm266_vm6, %v1172_v0, 0.0 }
  0xb3   :  { %v1188_v16 = vsub.f32 %v239_v55, %v562_v27  ;;  %v1190_v21 = vsub.f32 %v240_v1, %v568_v58  ;;  %v269_v26 = vadd.f32 %v268_v12, %v267_v49  ;;  %v270_v28 = vsel %vm266_vm6, %v1174_v57, 0.0 }
  0xb4   :  { %v830_v30 = vpop.eup %829  ;;  %vm1197_vm7 = vcmp.lt.s32.totalorder %v1106_v11, %v671_v19  ;;  %v346_v32 = vadd.f32 %v828_v46, %v345_v6  ;;  %v573_v37 = vmul.f32 1.442695, %v1181_v59  ;;  %v575_v55 = vmul.f32 1.442695, %v1184_v61 }
  0xb5   :  { %v272_v1 = vsel %vm266_vm6, %v1176_v5, 0.0  ;;  %v832_v38 = vpop.eup %831  ;;  %v351_v39 = vrot.slane %v830_v30, 4  ;;  %v577_v40 = vmul.f32 1.442695, %v1188_v16  ;;  %v579_v41 = vmul.f32 1.442695, %v1190_v21 }
  0xb6   :  { %v271_v45 = vadd.f32 %v270_v28, %v269_v26  ;;  %v1207_v8 = vpop.eup %833  ;;  %v692_v10 = vrot.slane %v1128_v35, 2  ;;  %v347_v62 = vrot.slane %v346_v32, 2  ;;  %835 = vpow2.f32 %v573_v37 }
  0xb7   :  { %v352_v22 = vadd.f32 %v830_v30, %v351_v39  ;;  %837 = vpow2.f32 %v575_v55  ;;  %v357_v43 = vrot.slane %v832_v38, 4  ;;  %v1223_v56 = vsel %vm297_vm8, 1.0, %v1396_v50 }
  0xb8   :  { %v273_v9 = vadd.f32 %v272_v1, %v271_v45  ;;  %v348_v63 = vadd.f32 %v347_v62, %v346_v32  ;;  %839 = vpow2.f32 %v577_v40  ;;  %v1226_v46 = vsel %vm298_vm9, 1.0, %v1396_v50 }
  0xb9   :  { %v353_v53 = vrot.slane %v352_v22, 2  ;;  %841 = vpow2.f32 %v579_v41  ;;  %v1229_v27 = vsel %vm299_vm10, 1.0, %v1396_v50  ;;  %v448_v58 = vmax.f32 %v1069_v18, %v447_v42 }
  0xba   :  { %274 = vadd.xlane.f32.xlu2 %v273_v9  ;;  %v349_v14 = vrot.slane %v348_v63, 1  ;;  %v1236_v6 = vsub.f32 %v1041_v23, %v1085_v3  ;;  %v463_v12 = vrot.slane %v1141_v48, 4  ;;  %v469_v26 = vrot.slane %v1143_v13, 4 }
  0xbb   :  { %v354_v49 = vadd.f32 %v353_v53, %v352_v22  ;;  %v1241_v32 = vsel %vm300_vm11, 1.0, %v1396_v50  ;;  %v449_v37 = vrot.slane %v448_v58, 1  ;;  %v363_v55 = vrot.slane %v1207_v8, 4 }
  0xbc   :  { %v836_v28 = vpop.eup %835  ;;  %v350_v30 = vadd.f32 %v349_v14, %v348_v63  ;;  %v459_v42 = vmul.f32 1.442695, %v1236_v6  ;;  %v464_v23 = vadd.f32 %v1141_v48, %v463_v12  ;;  %v470_v45 = vadd.f32 %v1143_v13, %v469_v26 }
  0xbd   :  { %v838_v1 = vpop.eup %837  ;;  %v355_v39 = vrot.slane %v354_v49, 1  ;;  %v581_v18 = vrot.slane %v836_v28, 4  ;;  %v450_v41 = vmax.f32 %v448_v58, %v449_v37  ;;  %v1252_v63 = vsel %vm1197_vm7, %v1106_v11, %v671_v19 }
  0xbe   :  { %v840_v3 = vpop.eup %839  ;;  %843 = vlog2.f32 %v350_v30  ;;  %v587_v40 = vrot.slane %v838_v1, 4  ;;  %v465_v14 = vrot.slane %v464_v23, 2  ;;  %v471_v12 = vrot.slane %v470_v45, 2 }
  0xbf   :  { %v842_v62 = vpop.eup %841  ;;  %v356_v22 = vadd.f32 %v355_v39, %v354_v49  ;;  %v582_v9 = vadd.f32 %v836_v28, %v581_v18  ;;  %845 = vpow2.f32 %v459_v42  ;;  %v1255_v48 = vsub.f32 %v1043_v24, %v450_v41 }
  0xc0   :  { %v588_v53 = vadd.f32 %v838_v1, %v587_v40  ;;  %vm666_vm12 = vcmp.eq.f32.partialorder %v1043_v24, %v450_v41  ;;  %v358_v13 = vadd.f32 %v832_v38, %v357_v43  ;;  %v466_v28 = vadd.f32 %v465_v14, %v464_v23 }
  0xc1   :  { %847 = vlog2.f32 %v356_v22  ;;  %v583_v58 = vrot.slane %v582_v9, 2  ;;  %v461_v26 = vmul.f32 1.442695, %v1255_v48  ;;  %v472_v30 = vadd.f32 %v471_v12, %v470_v45 }
  0xc2   :  { %v589_v49 = vrot.slane %v588_v53, 2  ;;  %v593_v47 = vrot.slane %v840_v3, 4  ;;  %v1260_v11 = vsel %vm666_vm12, %v1012_v54, 8  ;;  %v359_v19 = vrot.slane %v358_v13, 2 }
  0xc3   :  { %v584_v37 = vadd.f32 %v583_v58, %v582_v9  ;;  %849 = vpow2.f32 %v461_v26  ;;  %v467_v18 = vrot.slane %v466_v28, 1  ;;  %v473_v42 = vrot.slane %v472_v30, 1 }
  0xc4   :  { %v844_v1 = vpop.eup %843  ;;  %v590_v39 = vadd.f32 %v589_v49, %v588_v53  ;;  %v360_v38 = vadd.f32 %v359_v19, %v358_v13  ;;  %v364_v43 = vadd.f32 %v1207_v8, %v363_v55  ;;  %v698_v9 = vrot.slane %v1260_v11, 4 }
  0xc5   :  { %v846_v40 = vpop.eup %845  ;;  %v1262_v22 = vmul.f32 0.6931472, %v844_v1  ;;  %v585_v24 = vrot.slane %v584_v37, 1  ;;  %v468_v41 = vadd.f32 %v467_v18, %v466_v28  ;;  %v474_v12 = vadd.f32 %v473_v42, %v472_v30 }
  0xc6   :  { %v591_v23 = vrot.slane %v590_v39, 1  ;;  %v475_v45 = vrot.slane %v846_v40, 4  ;;  %v361_v58 = vrot.slane %v360_v38, 1  ;;  %v365_v19 = vrot.slane %v364_v43, 2 }
  0xc7   :  { %v848_v54 = vpop.eup %847  ;;  %v377_v14 = vsub.f32 %v1149_v15, %v1262_v22  ;;  %v586_v53 = vadd.f32 %v585_v24, %v584_v37  ;;  %851 = vlog2.f32 %v468_v41  ;;  %v594_v8 = vadd.f32 %v840_v3, %v593_v47 }
  0xc8   :  { %v372_v49 = vmul.f32 0.6931472, %v848_v54  ;;  %v592_v26 = vadd.f32 %v591_v23, %v590_v39  ;;  %v476_v1 = vadd.f32 %v846_v40, %v475_v45  ;;  %v362_v13 = vadd.f32 %v361_v58, %v360_v38 }
  0xc9   :  { %853 = vlog2.f32 %v586_v53  ;;  %v850_v55 = vpop.eup %849  ;;  %v599_v36 = vrot.slane %v842_v62, 4  ;;  %v366_v15 = vadd.f32 %v365_v19, %v364_v43  ;;  %v595_v37 = vrot.slane %v594_v8, 2 }
  0xca   :  { %v378_v28 = vsub.f32 %v1156_v4, %v372_v49  ;;  %855 = vlog2.f32 %v592_v26  ;;  %v477_v18 = vrot.slane %v476_v1, 2  ;;  %v481_v50 = vrot.slane %v850_v55, 4 }
  0xcb   :  { %857 = vlog2.f32 %v474_v12  ;;  %v600_v42 = vadd.f32 %v842_v62, %v599_v36  ;;  %v674_v39 = vrot.slane %v1252_v63, 2  ;;  %v367_v22 = vrot.slane %v366_v15, 1 }
  0xcc   :  { %v478_v30 = vadd.f32 %v477_v18, %v476_v1  ;;  %859 = vlog2.f32 %v362_v13  ;;  %v482_v40 = vadd.f32 %v850_v55, %v481_v50  ;;  %v596_v24 = vadd.f32 %v595_v37, %v594_v8 }
  0xcd   :  { %vm684_vm13 = vcmp.lt.s32.totalorder %v1123_v29, %v683_v34  ;;  %v852_v4 = vpop.eup %851  ;;  %v601_v47 = vrot.slane %v600_v42, 2  ;;  %vm675_vm14 = vcmp.lt.s32.totalorder %v1252_v63, %v674_v39  ;;  %v368_v50 = vadd.f32 %v367_v22, %v366_v15 }
  0xce   :  { %v479_v3 = vrot.slane %v478_v30, 1  ;;  %v1277_v38 = vsel %vm684_vm13, %v1123_v29, %v683_v34  ;;  %v483_v62 = vrot.slane %v482_v40, 2  ;;  %v488_v43 = vmul.f32 0.6931472, %v852_v4 }
  0xcf   :  { %v854_v36 = vpop.eup %853  ;;  %v597_v23 = vrot.slane %v596_v24, 1  ;;  %v602_v53 = vadd.f32 %v601_v47, %v600_v42  ;;  %v1280_v12 = vsel %vm675_vm14, %v1252_v63, %v674_v39  ;;  %861 = vlog2.f32 %v368_v50 }
  0xd0   :  { %v856_v41 = vpop.eup %855  ;;  %v606_v45 = vmul.f32 0.6931472, %v854_v36  ;;  %v480_v54 = vadd.f32 %v479_v3, %v478_v30  ;;  %v484_v26 = vadd.f32 %v483_v62, %v482_v40  ;;  %v495_v1 = vsub.f32 %v1096_v51, %v488_v43 }
  0xd1   :  { %v858_v58 = vpop.eup %857  ;;  %v1282_v49 = vmul.f32 0.6931472, %v856_v41  ;;  %v381_v19 = vmul.f32 %v1223_v56, %v377_v14  ;;  %v382_v37 = vmul.f32 %v1226_v46, %v378_v28  ;;  %v598_v30 = vadd.f32 %v597_v23, %v596_v24 }
  0xd2   :  { %v860_v29 = vpop.eup %859  ;;  %v613_v34 = vsub.f32 %v1181_v59, %v606_v45  ;;  %v490_v13 = vmul.f32 0.6931472, %v858_v58  ;;  %863 = vlog2.f32 %v480_v54  ;;  %v485_v55 = vrot.slane %v484_v26, 1 }
  0xd3   :  { %v614_v8 = vsub.f32 %v1184_v61, %v1282_v49  ;;  %v499_v63 = vmul.f32 %v1223_v56, %v495_v1  ;;  %v374_v18 = vmul.f32 0.6931472, %v860_v29  ;;  %v385_v51 = vrot.slane %v381_v19, 4 }
  0xd4   :  { %v496_v15 = vsub.f32 %v1099_v52, %v490_v13  ;;  %v486_v42 = vadd.f32 %v485_v55, %v484_v26  ;;  %v603_v40 = vrot.slane %v602_v53, 1  ;;  %v391_v4 = vrot.slane %v382_v37, 4 }
  0xd5   :  { %v503_v39 = vrot.slane %v499_v63, 4  ;;  %v379_v59 = vsub.f32 %v1159_v44, %v374_v18  ;;  %v386_v22 = vadd.f32 %v385_v51, %v381_v19  ;;  %865 = vlog2.f32 %v598_v30  ;;  %v862_v3 = vpop.eup %861 }
  0xd6   :  { %v500_v14 = vmul.f32 %v1226_v46, %v496_v15  ;;  %867 = vlog2.f32 %v486_v42  ;;  %v604_v52 = vadd.f32 %v603_v40, %v602_v53  ;;  %v376_v43 = vmul.f32 0.6931472, %v862_v3 }
  0xd7   :  { %v504_v47 = vadd.f32 %v503_v39, %v499_v63  ;;  %v383_v36 = vmul.f32 %v1229_v27, %v379_v59  ;;  %v387_v24 = vrot.slane %v386_v22, 2  ;;  %v392_v50 = vadd.f32 %v391_v4, %v382_v37 }
  0xd8   :  { %v864_v62 = vpop.eup %863  ;;  %v509_v28 = vrot.slane %v500_v14, 4  ;;  %869 = vlog2.f32 %v604_v52  ;;  %v380_v54 = vsub.f32 %v1162_v33, %v376_v43  ;;  %v1298_v53 = vmul.f32 %v1223_v56, %v613_v34 }
  0xd9   :  { %v492_v23 = vmul.f32 0.6931472, %v864_v62  ;;  %v505_v41 = vrot.slane %v504_v47, 2  ;;  %v397_v44 = vrot.slane %v383_v36, 4  ;;  %v388_v58 = vadd.f32 %v387_v24, %v386_v22 }
  0xda   :  { %v510_v45 = vadd.f32 %v509_v28, %v500_v14  ;;  %v393_v26 = vrot.slane %v392_v50, 2  ;;  %v384_v63 = vmul.f32 %v1241_v32, %v380_v54  ;;  %vm1324_vm15 = vcmp.lt.s32.totalorder %v1260_v11, %v698_v9 }
  0xdb   :  { %v497_v1 = vsub.f32 %v1236_v6, %v492_v23  ;;  %v506_v29 = vadd.f32 %v505_v41, %v504_v47  ;;  %v398_v13 = vadd.f32 %v397_v44, %v383_v36  ;;  %v866_v19 = vpop.eup %865  ;;  %v389_v18 = vrot.slane %v388_v58, 1 }
  0xdc   :  { %v511_v55 = vrot.slane %v510_v45, 2  ;;  %v394_v15 = vadd.f32 %v393_v26, %v392_v50  ;;  %v868_v37 = vpop.eup %867  ;;  %v610_v42 = vmul.f32 0.6931472, %v866_v19  ;;  %v403_v4 = vrot.slane %v384_v63, 4 }
  0xdd   :  { %v501_v51 = vmul.f32 %v1229_v27, %v497_v1  ;;  %v507_v30 = vrot.slane %v506_v29, 1  ;;  %v399_v33 = vrot.slane %v398_v13, 2  ;;  %v494_v39 = vmul.f32 0.6931472, %v868_v37 }
  0xde   :  { %v512_v59 = vadd.f32 %v511_v55, %v510_v45  ;;  %v390_v6 = vadd.f32 %v389_v18, %v388_v58  ;;  %v395_v40 = vrot.slane %v394_v15, 1  ;;  %v870_v14 = vpop.eup %869  ;;  %v404_v24 = vadd.f32 %v403_v4, %v384_v63 }
  0xdf   :  { %v508_v22 = vadd.f32 %v507_v30, %v506_v29  ;;  %v515_v56 = vrot.slane %v501_v51, 4  ;;  %v400_v34 = vadd.f32 %v399_v33, %v398_v13  ;;  %v498_v3 = vsub.f32 %v1255_v48, %v494_v39 }
  0xe0   :  { %v513_v47 = vrot.slane %v512_v59, 1  ;;  %v396_v36 = vadd.f32 %v395_v40, %v394_v15  ;;  %v409_v52 = vsub.f32 0.0, %v390_v6  ;;  %v405_v26 = vrot.slane %v404_v24, 2 }
  0xe1   :  { %v516_v62 = vadd.f32 %v515_v56, %v501_v51  ;;  %v527_v28 = vsub.f32 0.0, %v508_v22  ;;  %v401_v43 = vrot.slane %v400_v34, 1  ;;  %v502_v50 = vmul.f32 %v1241_v32, %v498_v3 }
  0xe2   :  { %v514_v23 = vadd.f32 %v513_v47, %v512_v59  ;;  %v410_v41 = vsub.f32 0.0, %v396_v36  ;;  %v413_v44 = vmul.f32 %v409_v52, %v1170_v31  ;;  %v406_v63 = vadd.f32 %v405_v26, %v404_v24 }
  0xe3   :  { %v517_v45 = vrot.slane %v516_v62, 2  ;;  %v531_v54 = vmul.f32 %v527_v28, %v1170_v31  ;;  %v402_v58 = vadd.f32 %v401_v43, %v400_v34  ;;  %v521_v1 = vrot.slane %v502_v50, 4 }
  0xe4   :  { %v528_v48 = vsub.f32 0.0, %v514_v23  ;;  %v414_v29 = vmul.f32 %v410_v41, %v1172_v0  ;;  %v417_v13 = vsel %vm266_vm6, %v413_v44, 0.0  ;;  %v612_v30 = vmul.f32 0.6931472, %v870_v14 }
  0xe5   :  { %v518_v19 = vadd.f32 %v517_v45, %v516_v62  ;;  %v535_v55 = vsel %vm266_vm6, %v531_v54, 0.0  ;;  %v411_v18 = vsub.f32 0.0, %v402_v58  ;;  %v522_v15 = vadd.f32 %v521_v1, %v502_v50 }
  0xe6   :  { %v532_v37 = vmul.f32 %v528_v48, %v1172_v0  ;;  %v418_v51 = vsel %vm266_vm6, %v414_v29, 0.0  ;;  %v407_v39 = vrot.slane %v406_v63, 1  ;;  %v615_v56 = vsub.f32 %v1188_v16, %v610_v42 }
  0xe7   :  { %v519_v33 = vrot.slane %v518_v19, 1  ;;  %v415_v59 = vmul.f32 %v411_v18, %v1174_v57  ;;  %v419_v6 = vadd.f32 %v418_v51, %v417_v13  ;;  %v523_v40 = vrot.slane %v522_v15, 2 }
  0xe8   :  { %v536_v22 = vsel %vm266_vm6, %v532_v37, 0.0  ;;  %v616_v34 = vsub.f32 %v1190_v21, %v612_v30  ;;  %v408_v47 = vadd.f32 %v407_v39, %v406_v63  ;;  %v618_v14 = vmul.f32 %v1226_v46, %v614_v8 }
  0xe9   :  { %v520_v4 = vadd.f32 %v519_v33, %v518_v19  ;;  %v537_v3 = vadd.f32 %v536_v22, %v535_v55  ;;  %v420_v36 = vsel %vm266_vm6, %v415_v59, 0.0  ;;  %v524_v52 = vadd.f32 %v523_v40, %v522_v15 }
  0xea   :  { %v421_v62 = vadd.f32 %v420_v36, %v419_v6  ;;  %v619_v28 = vmul.f32 %v1229_v27, %v615_v56  ;;  %v412_v21 = vsub.f32 0.0, %v408_v47  ;;  %v620_v42 = vmul.f32 %v1241_v32, %v616_v34 }
  0xeb   :  { %v529_v43 = vsub.f32 0.0, %v520_v4  ;;  %v621_v24 = vrot.slane %v1298_v53, 4  ;;  %v525_v50 = vrot.slane %v524_v52, 1  ;;  %v627_v23 = vrot.slane %v618_v14, 4 }
  0xec   :  { %v633_v61 = vrot.slane %v619_v28, 4  ;;  %v677_v46 = vrot.slane %v1280_v12, 1  ;;  %v416_v49 = vmul.f32 %v412_v21, %v1176_v5  ;;  %v639_v41 = vrot.slane %v620_v42, 4 }
  0xed   :  { %v533_v27 = vmul.f32 %v529_v43, %v1174_v57  ;;  %v622_v8 = vadd.f32 %v621_v24, %v1298_v53  ;;  %v526_v44 = vadd.f32 %v525_v50, %v524_v52  ;;  %v628_v45 = vadd.f32 %v627_v23, %v618_v14 }
  0xee   :  { %v634_v54 = vadd.f32 %v633_v61, %v619_v28  ;;  %vm678_vm0 = vcmp.lt.s32.totalorder %v1280_v12, %v677_v46  ;;  %v422_v58 = vsel %vm266_vm6, %v416_v49, 0.0  ;;  %v640_v1 = vadd.f32 %v639_v41, %v620_v42 }
  0xef   :  { %v538_v32 = vsel %vm266_vm6, %v533_v27, 0.0  ;;  %v623_v26 = vrot.slane %v622_v8, 2  ;;  %v530_v48 = vsub.f32 0.0, %v526_v44  ;;  %v423_v13 = vadd.f32 %v422_v58, %v421_v62 }
  0xf0   :  { %v539_v29 = vadd.f32 %v538_v32, %v537_v3  ;;  %v629_v19 = vrot.slane %v628_v45, 2  ;;  %v635_v63 = vrot.slane %v634_v54, 2  ;;  %v641_v18 = vrot.slane %v640_v1, 2 }
  0xf1   :  { %v624_v55 = vadd.f32 %v623_v26, %v622_v8  ;;  %v679_v53 = vsel %vm678_vm0, %v1280_v12, %v677_v46  ;;  %v534_v15 = vmul.f32 %v530_v48, %v1176_v5  ;;  %424 = vadd.xlane.f32.xlu0 %v423_v13  ;;  %v686_v51 = vrot.slane %v1277_v38, 1 }
  0xf2   :  { %v630_v37 = vadd.f32 %v629_v19, %v628_v45  ;;  %vm693_vm1 = vcmp.lt.s32.totalorder %v1128_v35, %v692_v10  ;;  %v636_v33 = vadd.f32 %v635_v63, %v634_v54  ;;  %v642_v39 = vadd.f32 %v641_v18, %v640_v1 }
  0xf3   :  { %v625_v30 = vrot.slane %v624_v55, 1  ;;  %v694_v59 = vsel %vm693_vm1, %v1128_v35, %v692_v10  ;;  %v540_v6 = vsel %vm266_vm6, %v534_v15, 0.0  ;;  %vm687_vm2 = vcmp.lt.s32.totalorder %v1277_v38, %v686_v51 }
  0xf4   :  { %v631_v12 = vrot.slane %v630_v37, 1  ;;  %v695_v40 = vrot.slane %v694_v59, 1  ;;  %v541_v22 = vadd.f32 %v540_v6, %v539_v29  ;;  %v637_v34 = vrot.slane %v636_v33, 1 }
  0xf5   :  { %v626_v56 = vadd.f32 %v625_v30, %v624_v55  ;;  %v643_v4 = vrot.slane %v642_v39, 1  ;;  %v688_v47 = vsel %vm687_vm2, %v1277_v38, %v686_v51  ;;  %v700_v35 = vsel %vm1324_vm15, %v1260_v11, %v698_v9 }
  0xf6   :  { %v632_v3 = vadd.f32 %v631_v12, %v630_v37  ;;  %vm696_vm3 = vcmp.lt.s32.totalorder %v694_v59, %v695_v40  ;;  %542 = vadd.xlane.f32.xlu1 %v541_v22  ;;  %v638_v10 = vadd.f32 %v637_v34, %v636_v33  ;;  %v701_v28 = vrot.slane %v700_v35, 2 }
  0xf7   :  { %v644_v36 = vadd.f32 %v643_v4, %v642_v39  ;;  %v645_v52 = vsub.f32 0.0, %v626_v56  ;;  %v697_v62 = vsel %vm696_vm3, %v694_v59, %v695_v40  ;;  %vm708_vm4 = vcmp.eq.s32.totalorder %v688_v47, %v294_v20 }
  0xf8   :  { %v646_v14 = vsub.f32 0.0, %v632_v3  ;;  %v647_v43 = vsub.f32 0.0, %v638_v10  ;;  %vm707_vm7 = vcmp.eq.s32.totalorder %v679_v53, %v293_v60  ;;  %vm702_vm8 = vcmp.lt.s32.totalorder %v700_v35, %v701_v28 }
  0xf9   :  { %v648_v21 = vsub.f32 0.0, %v644_v36  ;;  %v649_v38 = vmul.f32 %v645_v52, %v1170_v31  ;;  %vm709_vm9 = vcmp.eq.s32.totalorder %v697_v62, %v295_v25  ;;  %v712_v11 = vsel %vm708_vm4, 1, %v925_v2 }
  0xfa   :  { %v650_v16 = vmul.f32 %v646_v14, %v1172_v0  ;;  %v651_v9 = vmul.f32 %v647_v43, %v1174_v57  ;;  %v703_v20 = vsel %vm702_vm8, %v700_v35, %v701_v28  ;;  %v715_v23 = vrot.slane %v712_v11, 7 }
  0xfb   :  { %v653_v42 = vsel %vm266_vm6, %v649_v38, 0.0  ;;  %v652_v24 = vmul.f32 %v648_v21, %v1176_v5  ;;  %v704_v50 = vrot.slane %v703_v20, 1  ;;  %v711_v0 = vsel %vm707_vm7, 1, %v925_v2 }
  0xfc   :  { %v654_v31 = vsel %vm266_vm6, %v650_v16, 0.0  ;;  %v713_v61 = vsel %vm709_vm9, 1, %v925_v2  ;;  %v656_v25 = vsel %vm266_vm6, %v651_v9, 0.0  ;;  %v718_v46 = vsel %vm266_vm6, %v711_v0, %v715_v23 }
  0xfd   :  { %v655_v60 = vadd.f32 %v654_v31, %v653_v42  ;;  %vm705_vm10 = vcmp.lt.s32.totalorder %v703_v20, %v704_v50  ;;  %v658_v49 = vsel %vm266_vm6, %v652_v24, 0.0  ;;  %v716_v5 = vrot.slane %v713_v61, 6 }
  0xfe   :  { %v706_v27 = vsel %vm705_vm10, %v703_v20, %v704_v50  ;;  %vm719_vm12 = vcmask 1042434   ;;  %vm721_vm13 = vcmask 1041408   ;;  %v1401_v32 = vmov 0.0  }
  0xff   :  { %v657_v57 = vadd.f32 %v656_v25, %v655_v60  ;;  %vm710_vm11 = vcmp.eq.s32.totalorder %v706_v27, %v296_v17  ;;  %v1402_v3 = vlaneseq  ;;  %vm762_vm9 = vcmask 57344  }
 0x100   :  { %v714_v41 = vsel %vm710_vm11, 1, %v925_v2 }
 0x101   :  { %v659_v8 = vadd.f32 %v658_v49, %v657_v57  ;;  %v717_v44 = vrot.slane %v714_v41, 5  ;;  %v751_v47 = vand.u32 127, %v1402_v3 }
 0x103   :  { %660 = vadd.xlane.f32.xlu2 %v659_v8  ;;  %v720_v45 = vsel %vm719_vm12, %v716_v5, %v717_v44  ;;  %vm754_vm3 = vcmp.eq.s32.totalorder %v751_v47, 1  ;;  %vm756_vm4 = vcmp.eq.s32.totalorder %v751_v47, 2  ;;  %vm758_vm7 = vcmp.eq.s32.totalorder %v751_v47, 3 }
 0x104   :  { %v722_v54 = vsel %vm721_vm13, %v718_v46, %v720_v45  ;;  %vm760_vm8 = vcmp.eq.s32.totalorder %v751_v47, 4 }
 0x105   :  { %vm723_vm14 = vcmp.ne.s32.totalorder %v722_v54, 0 }
 0x106   :  { %vm724_vm15 = vmand %vm254_vm5, %vm723_vm14 }
 0x107   :  { %v725_v58 = vsel %vm724_vm15, 1.0, %v1401_v32 }
 0x108   :  { %v727_v17 = vperm.slane %v725_v58, 0  ;;  %v728_v26 = vperm.slane %v725_v58, 1  ;;  %v729_v1 = vperm.slane %v725_v58, 2  ;;  %v730_v2 = vperm.slane %v725_v58, 3 }
 0x10a   :  { %v735_v48 = vsel %vm266_vm6, %v727_v17, 0.0  ;;  %v736_v29 = vsel %vm266_vm6, %v728_v26, 0.0  ;;  %v738_v13 = vsel %vm266_vm6, %v729_v1, 0.0  ;;  %v740_v55 = vsel %vm266_vm6, %v730_v2, 0.0 }
 0x10b   :  { %v737_v7 = vadd.f32 %v736_v29, %v735_v48  ;;  %vm752_vm6 = vcmp.eq.s32.totalorder %v751_v47, 0 }
 0x10d   :  { %v739_v19 = vadd.f32 %v738_v13, %v737_v7 }
 0x10f   :  { %v741_v63 = vadd.f32 %v740_v55, %v739_v19 }
 0x111   :  { %742 = vadd.xlane.f32.xlu2 %v741_v63 }
 0x12d   :  { %v275_v18 = vpop.xlane.xlu2 %274 }
 0x12e   :  { %v276_v53 = vadd.f32 1e-10, %v275_v18 }
 0x130   :  { %871 = vrcp.f32 %v276_v53  ;;  %vm282_vm5 = vweird.f32 %v276_v53  ;;  %v288_v33 = vand.u32 2147483648, %v276_v53  ;;  %v286_v59 = vand.u32 2147483647, %v276_v53 }
 0x132   :  { %v289_v6 = vor.u32 1.1754944e-38, %v288_v33  ;;  %vm287_vm2 = vcmp.eq.f32.partialorder %v286_v59, 8.507059e+37 }
 0x136   :  { %v872_v15 = vpop.eup %871 }
 0x137   :  { %v278_v37 = vmul.f32 %v872_v15, %v276_v53  ;;  %vm283_vm0 = vweird.f32 %v872_v15 }
 0x138   :  { %vm284_vm1 = vmor %vm282_vm5, %vm283_vm0 }
 0x139   :  { %v279_v51 = vsub.f32 1.0, %v278_v37 }
 0x13b   :  { %v280_v30 = vmul.f32 %v872_v15, %v279_v51 }
 0x13d   :  { %v281_v39 = vadd.f32 %v872_v15, %v280_v30 }
 0x13f   :  { %v285_v12 = vsel %vm284_vm1, %v872_v15, %v281_v39 }
 0x140   :  { %v290_v56 = vsel %vm287_vm2, %v289_v6, %v285_v12 }
 0x164   :  { %v425_v40 = vpop.xlane.xlu0 %424 }
 0x165   :  { %v426_v4 = vmul.f32 %v425_v40, %v290_v56 }
 0x167   :  { %v746_v36 = vmul.f32 0.2, %v426_v4 }
 0x169   :  { %v543_v34 = vpop.xlane.xlu1 %542 }
 0x16a   :  { %v544_v35 = vmul.f32 %v543_v34, %v290_v56 }
 0x16c   :  { %v745_v52 = vmul.f32 0.6, %v544_v35  ;;  %v753_v14 = vsel %vm752_vm6, %v544_v35, 0.0 }
 0x16d   :  { %v755_v21 = vsel %vm754_vm3, %v426_v4, %v753_v14 }
 0x16e   :  { %v747_v28 = vadd.f32 %v746_v36, %v745_v52 }
 0x176   :  { %v661_v22 = vpop.xlane.xlu2 %660 }
 0x177   :  { %v662_v10 = vmul.f32 %v661_v22, %v290_v56 }
 0x179   :  { %v748_v62 = vmul.f32 0.2, %v662_v10  ;;  %v757_v11 = vsel %vm756_vm4, %v662_v10, %v755_v21 }
 0x17b   :  { %v749_v16 = vadd.f32 %v748_v62, %v747_v28 }
 0x184   :  { %v743_v43 = vpop.xlane.xlu2 %742 }
 0x185   :  { %v744_v38 = vmul.f32 %v743_v43, %v290_v56 }
 0x187   :  { %v759_v9 = vsel %vm758_vm7, %v744_v38, %v757_v11 }
 0x188   :  { %v761_v42 = vsel %vm760_vm8, %v749_v16, %v759_v9 }
 0x189   :  { %763 = vst.msk [vmem:[#allocation4] sm:$0x1] %vm762_vm9, %v761_v42 }
 0x18a   :  { %787 = dma.vmem_to_hbm [thread:$0]  %s783_s14, 16, %s785_s17, [#allocation5]  }
 0x18b   :  { %921 = dma.done.wait [#allocation3], 1536  }
 0x18c   :  { %922 = vsyncadd [#allocation3], 4294965760 }
 0x18d   :  { %923 = dma.done.wait [#allocation5], 16  }
 0x18e   :  { %924 = vsyncadd [#allocation5], 4294967280 }
 0x18f   :  { %796 = vsyncpa [#allocation3], 1 }
 0x190   :  { %797 = vsyncpa [#allocation5], 1 }

</bundles_post_ra>
